<compile_context>
chip_gen: v7x
topology: tpu7x:2x2x1
jax: 0.10.0
libtpu: 0.0.40
codegen_flags: <defaults>
</compile_context>

<pallas_src>
import jax
import jax.numpy as jnp
from jax.experimental import pallas as pl
from jax.experimental.pallas import tpu as pltpu

LANE = 128


def _round_up(a, m):
    return ((a + m - 1) // m) * m


def gate_kernel(x_ref, w1_ref, b_ref, w2_ref, out_ref):
    # fc1: [TB, D_in]@[D_in, P] on the MXU in bf16, f32 accumulation.
    x_bf = x_ref[...].astype(jnp.bfloat16)
    h = jnp.dot(x_bf, w1_ref[...], preferred_element_type=jnp.float32)
    h = h + b_ref[0:1, :]              # bias + ReLU in f32 (VPU filler, free)
    h = jnp.maximum(h, 0.0)
    # fc2: [TB, P]@[P, P]
    o = jnp.dot(h.astype(jnp.bfloat16), w2_ref[...],
                preferred_element_type=jnp.float32)
    o = o + b_ref[1:2, :]
    out_ref[...] = o.astype(out_ref.dtype)  # lane-dense (P=128) unmasked store


def gate_forward(x, w1p, bias, w2p, num_experts):
    """x: [B, D_in] f32; w1p: [D_in, P] bf16; bias: [2, P] f32; w2p: [P, P] bf16.
    Returns [B, num_experts] f32 (padded expert columns sliced off)."""
    B, D_in = x.shape
    P = w1p.shape[1]

    # Batch tile: multiple of 8 (f32 sublanes), capped so tiles stay tiny vs VMEM.
    tb = min(512, _round_up(B, 8))
    Bp = _round_up(B, tb)
    if Bp != B:
        x = jnp.pad(x, ((0, Bp - B), (0, 0)))
    grid = (Bp // tb,)

    flops = 2 * Bp * (D_in * P + P * P)
    bytes_accessed = int(x.size * 4 + w1p.size * 2 + bias.size * 4
                         + w2p.size * 2 + Bp * P * 4)

    out = pl.pallas_call(
        gate_kernel,
        out_shape=jax.ShapeDtypeStruct((Bp, P), jnp.float32),
        grid=grid,
        in_specs=[
            pl.BlockSpec((tb, D_in), lambda i: (i, 0)),   # x: streamed per tile
            pl.BlockSpec((D_in, P), lambda i: (0, 0)),    # w1: VMEM-resident
            pl.BlockSpec((2, P), lambda i: (0, 0)),       # packed biases
            pl.BlockSpec((P, P), lambda i: (0, 0)),       # w2: VMEM-resident
        ],
        out_specs=pl.BlockSpec((tb, P), lambda i: (i, 0)),
        compiler_params=pltpu.CompilerParams(
            dimension_semantics=("parallel",)),
        cost_estimate=pl.CostEstimate(
            flops=flops, transcendentals=0, bytes_accessed=bytes_accessed),
    )(x, w1p, bias, w2p)
    return out[:B, :num_experts]


def init_gate_params(key, input_size, hidden_size=50, num_experts=10):
    """Deterministic f32 params (nn.Linear-style uniform init), weights stored
    as [in_features, out_features] so the kernel does plain x @ W + b."""
    k1, k2, k3, k4 = jax.random.split(key, 4)
    lim1 = 1.0 / jnp.sqrt(input_size)
    lim2 = 1.0 / jnp.sqrt(hidden_size)
    w1 = jax.random.uniform(k1, (input_size, hidden_size), jnp.float32, -lim1, lim1)
    b1 = jax.random.uniform(k2, (1, hidden_size), jnp.float32, -lim1, lim1)
    w2 = jax.random.uniform(k3, (hidden_size, num_experts), jnp.float32, -lim2, lim2)
    b2 = jax.random.uniform(k4, (1, num_experts), jnp.float32, -lim2, lim2)
    return w1, b1, w2, b2


def pack_gate_params(w1, b1, w2, b2):
    """Pad H and E to a common lane-aligned P (128), cast weights to bf16, and
    pack both biases (f32) into one [2, P] array."""
    D_in, H = w1.shape
    _, E = w2.shape
    P = max(_round_up(H, LANE), _round_up(E, LANE))
    w1p = jnp.zeros((D_in, P), jnp.bfloat16).at[:, :H].set(w1.astype(jnp.bfloat16))
    w2p = jnp.zeros((P, P), jnp.bfloat16).at[:H, :E].set(w2.astype(jnp.bfloat16))
    bias = jnp.zeros((2, P), jnp.float32)
    bias = bias.at[0, :H].set(b1[0])
    bias = bias.at[1, :E].set(b2[0])
    return w1p, bias, w2p


if __name__ == "__main__":
    key = jax.random.PRNGKey(0)
    kx, kp = jax.random.split(key)

    batch = 8
    input_size = 32
    hidden_size = 50
    num_experts = 10

    x = jax.random.normal(kx, (batch, input_size), jnp.float32)
    w1, b1, w2, b2 = init_gate_params(kp, input_size, hidden_size, num_experts)
    w1p, bias, w2p = pack_gate_params(w1, b1, w2, b2)

    out = gate_forward(x, w1p, bias, w2p, num_experts)
    out = jax.block_until_ready(out)

    # Reference check in plain f32 JAX (same math as the PyTorch forward).
    # bf16 matmul operands -> loosened tolerance.
    ref = jnp.maximum(x @ w1 + b1, 0.0) @ w2 + b2
    assert out.shape == (batch, num_experts)
    assert jnp.allclose(out, ref, atol=3e-2, rtol=3e-2), float(
        jnp.max(jnp.abs(out - ref)))

    print("KERNEL_OK")
</pallas_src>

<mosaic_0001>
module attributes {stable_mosaic.version = 11 : i64} {
  func.func @gate_kernel(%arg0: i32, %arg1: memref<8x32xf32, #tpu.memory_space<vmem>>, %arg2: memref<32x128xbf16, #tpu.memory_space<vmem>>, %arg3: memref<2x128xf32, #tpu.memory_space<vmem>>, %arg4: memref<128x128xbf16, #tpu.memory_space<vmem>>, %arg5: memref<8x128xf32, #tpu.memory_space<vmem>>) attributes {dimension_semantics = [#tpu.dimension_semantics<parallel>], iteration_bounds = array<i64: 1>, scalar_prefetch = 0 : i64, scratch_operands = 0 : i64, tpu.core_type = #tpu.core_type<tc>, window_params = [{transform_indices = @transform_0, window_bounds = array<i64: 8, 32>}, {pipeline_mode = #tpu.pipeline_mode<synchronous>, transform_indices = @transform_1, window_bounds = array<i64: 32, 128>}, {pipeline_mode = #tpu.pipeline_mode<synchronous>, transform_indices = @transform_2, window_bounds = array<i64: 2, 128>}, {pipeline_mode = #tpu.pipeline_mode<synchronous>, transform_indices = @transform_3, window_bounds = array<i64: 128, 128>}, {transform_indices = @transform_4, window_bounds = array<i64: 8, 128>}]} {
    %c0 = arith.constant 0 : index
    %c0_0 = arith.constant 0 : index
    %0 = vector.load %arg1[%c0, %c0_0] : memref<8x32xf32, #tpu.memory_space<vmem>>, vector<8x32xf32>
    %1 = arith.truncf %0 : vector<8x32xf32> to vector<8x32xbf16>
    %c0_1 = arith.constant 0 : index
    %c0_2 = arith.constant 0 : index
    %2 = vector.load %arg2[%c0_1, %c0_2] : memref<32x128xbf16, #tpu.memory_space<vmem>>, vector<32x128xbf16>
    %cst = arith.constant dense<0.000000e+00> : vector<8x128xf32>
    %3 = tpu.matmul %1, %2, %cst {dimension_numbers = #tpu.dot_dimension_numbers<[1], [0], [0], [1], [0, 0, 1, 1], [], []>} : vector<8x32xbf16>, vector<32x128xbf16>, vector<8x128xf32> -> vector<8x128xf32>
    %c0_3 = arith.constant 0 : index
    %c0_4 = arith.constant 0 : index
    %4 = vector.load %arg3[%c0_3, %c0_4] : memref<2x128xf32, #tpu.memory_space<vmem>>, vector<1x128xf32>
    %5 = vector.broadcast %4 : vector<1x128xf32> to vector<8x128xf32>
    %6 = arith.addf %3, %5 : vector<8x128xf32>
    %cst_5 = arith.constant 0.000000e+00 : f32
    %7 = vector.broadcast %cst_5 : f32 to vector<8x128xf32>
    %8 = arith.maximumf %6, %7 : vector<8x128xf32>
    %9 = arith.truncf %8 : vector<8x128xf32> to vector<8x128xbf16>
    %c0_6 = arith.constant 0 : index
    %c0_7 = arith.constant 0 : index
    %10 = vector.load %arg4[%c0_6, %c0_7] : memref<128x128xbf16, #tpu.memory_space<vmem>>, vector<128x128xbf16>
    %cst_8 = arith.constant dense<0.000000e+00> : vector<8x128xf32>
    %11 = tpu.matmul %9, %10, %cst_8 {dimension_numbers = #tpu.dot_dimension_numbers<[1], [0], [0], [1], [0, 0, 1, 1], [], []>} : vector<8x128xbf16>, vector<128x128xbf16>, vector<8x128xf32> -> vector<8x128xf32>
    %c1 = arith.constant 1 : index
    %c0_9 = arith.constant 0 : index
    %12 = vector.load %arg3[%c1, %c0_9] : memref<2x128xf32, #tpu.memory_space<vmem>>, vector<1x128xf32>
    %13 = vector.broadcast %12 : vector<1x128xf32> to vector<8x128xf32>
    %14 = arith.addf %11, %13 : vector<8x128xf32>
    %c0_10 = arith.constant 0 : index
    %c0_11 = arith.constant 0 : index
    %15 = vector.load %arg5[%c0_10, %c0_11] : memref<8x128xf32, #tpu.memory_space<vmem>>, vector<8x128xf32>
    tpu.vector_store %arg5[%c0_10, %c0_11], %14 {strides = array<i32>} : memref<8x128xf32, #tpu.memory_space<vmem>>, vector<8x128xf32>,
    return
  }
  func.func @transform_0(%arg0: i32) -> (i32, i32) {
    %c0_i32 = arith.constant 0 : i32
    %c0_i32_0 = arith.constant 0 : i32
    return %arg0, %c0_i32 : i32, i32
  }
  func.func @transform_1(%arg0: i32) -> (i32, i32) {
    %c0_i32 = arith.constant 0 : i32
    %c0_i32_0 = arith.constant 0 : i32
    %c0_i32_1 = arith.constant 0 : i32
    return %c0_i32, %c0_i32_0 : i32, i32
  }
  func.func @transform_2(%arg0: i32) -> (i32, i32) {
    %c0_i32 = arith.constant 0 : i32
    %c0_i32_0 = arith.constant 0 : i32
    %c0_i32_1 = arith.constant 0 : i32
    return %c0_i32, %c0_i32_0 : i32, i32
  }
  func.func @transform_3(%arg0: i32) -> (i32, i32) {
    %c0_i32 = arith.constant 0 : i32
    %c0_i32_0 = arith.constant 0 : i32
    %c0_i32_1 = arith.constant 0 : i32
    return %c0_i32, %c0_i32_0 : i32, i32
  }
  func.func @transform_4(%arg0: i32) -> (i32, i32) {
    %c0_i32 = arith.constant 0 : i32
    %c0_i32_0 = arith.constant 0 : i32
    return %arg0, %c0_i32 : i32, i32
  }
}

</mosaic_0001>

<bundles_post_ra>
// kernel: tpu_custom_call.1
= control target key start
LH: loop header
LB: loop body
LE: loop exit
PB: predicated region body
PF: predicated region fallthrough
CT: control target
= control target key end

     0   :  { %9 = vsyncpa [#allocation3], 0  ;;  %s511_s0 = inlined_call_operand.hbm [shape: f32[8,32], index: 0, kind: input, shape index: {}]   ;;  %s512_s1 = inlined_call_operand.hbm [shape: bf16[32,128], index: 1, kind: input, shape index: {}]   ;;  %s513_s2 = inlined_call_operand.vmem [shape: f32[2,128], index: 2, kind: input, shape index: {}]   ;;  %s514_s3 = inlined_call_operand.hbm [shape: bf16[128,128], index: 3, kind: input, shape index: {}]   ;;  %s515_s4 = inlined_call_operand.hbm [shape: f32[8,128], index: 4, kind: output, shape index: {}]  }
   0x1   :  { %10 = vsyncpa [#allocation6], 0 }
   0x2   :  { %11 = vsyncpa [#allocation4], 0  ;;  %s418_s15 = smov [#allocation5]   ;;  %s324_s19 = scalar_lea.hbm %s512_s1, 256 }
   0x3   :  { %s27_s16 = sshll.u32 %s418_s15, 4  ;;  %p325_p0 = scmp.ne.s32.totalorder %s512_s1, %s324_s19  ;;  %s28_s16 = int_to_ptr.vmem [resolvable:$true] %s27_s16 }
   0x4   :  { %p328_p1 = scmp.lt.u32.totalorder %s324_s19, %s512_s1 }
   0x6   :  { %p330_p2 = pnand %p328_p1, %p325_p0 }
   0x8   :  { %333 = shalt.err (!%p330_p2)
}
   0x9   :  { %s334_s24 = scalar_lea.vmem %s28_s16, 256  ;;  %p339_p4 = scmp.lt.s32.totalorder %s28_s16, %s28_s16 }
   0xa   :  { %p335_p3 = scmp.ne.s32.totalorder %s28_s16, %s334_s24  ;;  %p340_p5 = scmp.lt.s32.totalorder %s334_s24, %s334_s24 }
   0xc   :  { %p341_p6 = por %p340_p5, %p339_p4 }
   0xe   :  { %p342_p7 = pnand %p341_p6, %p335_p3 }
  0x10   :  { %345 = shalt.err (!%p342_p7)
}
  0x11   :  { %s419_s25 = smov 64   ;;  %s420_s26 = smov 4  }
  0x12   :  { %33 = dma.hbm_to_vmem [thread:$0]  %s512_s1, 256, %s28_s16, [#allocation6], %s419_s25, %s419_s25, %s420_s26  }
  0x13   :  { %s421_s29 = smov [#allocation2]   ;;  %s422_s5 = smov [#allocation7]  }
  0x14   :  { %s18_s30 = sshll.u32 %s421_s29, 4  ;;  %s41_s6 = sshll.u32 %s422_s5, 4  ;;  %s19_s30 = int_to_ptr.vmem [resolvable:$true] %s18_s30  ;;  %s42_s6 = int_to_ptr.vmem [resolvable:$true] %s41_s6 }
  0x15   :  { %s346_s9 = scalar_lea.hbm %s511_s0, 128 }
  0x16   :  { %p347_p8 = scmp.ne.s32.totalorder %s511_s0, %s346_s9  ;;  %p350_p9 = scmp.lt.u32.totalorder %s346_s9, %s511_s0 }
  0x18   :  { %p352_p10 = pnand %p350_p9, %p347_p8 }
  0x1a   :  { %355 = shalt.err (!%p352_p10)
}
  0x1b   :  { %s356_s1 = scalar_lea.vmem %s19_s30, 128  ;;  %p361_p12 = scmp.lt.s32.totalorder %s19_s30, %s19_s30 }
  0x1c   :  { %p357_p11 = scmp.ne.s32.totalorder %s19_s30, %s356_s1  ;;  %p362_p13 = scmp.lt.s32.totalorder %s356_s1, %s356_s1 }
  0x1e   :  { %p363_p0 = por %p362_p13, %p361_p12 }
  0x20   :  { %p364_p1 = pnand %p363_p0, %p357_p11 }
  0x22   :  { %367 = shalt.err (!%p364_p1)
}
  0x23   :  { %21 = dma.hbm_to_vmem [thread:$0]  %s511_s0, 128, %s19_s30, [#allocation3]  }
  0x24   :  { %s368_s18 = scalar_lea.hbm %s514_s3, 1024 }
  0x25   :  { %p369_p2 = scmp.ne.s32.totalorder %s514_s3, %s368_s18  ;;  %p372_p3 = scmp.lt.u32.totalorder %s368_s18, %s514_s3 }
  0x27   :  { %p374_p4 = pnand %p372_p3, %p369_p2 }
  0x29   :  { %377 = shalt.err (!%p374_p4)
}
  0x2a   :  { %s378_s23 = scalar_lea.vmem %s42_s6, 1024  ;;  %p383_p6 = scmp.lt.s32.totalorder %s42_s6, %s42_s6 }
  0x2b   :  { %p379_p5 = scmp.ne.s32.totalorder %s42_s6, %s378_s23  ;;  %p384_p7 = scmp.lt.s32.totalorder %s378_s23, %s378_s23 }
  0x2d   :  { %p385_p8 = por %p384_p7, %p383_p6 }
  0x2f   :  { %p386_p9 = pnand %p385_p8, %p379_p5 }
  0x31   :  { %389 = shalt.err (!%p386_p9)
}
  0x32   :  { %47 = dma.hbm_to_vmem [thread:$0]  %s514_s3, 1024, %s42_s6, [#allocation6], %s419_s25, %s419_s25, %s420_s26  }
  0x33   :  { %412 = dma.done.wait [#allocation3], 128  }
  0x34   :  { %413 = vsyncadd [#allocation3], 4294967168 }
  0x35   :  { %414 = dma.done.wait [#allocation6], 1280  }
  0x36   :  { %415 = vsyncadd [#allocation6], 4294966016  ;;  %v423_v0 = vmov 0.0   ;;  %vm424_vm0 = vmmov 0   ;;  %v314_v1 = vld [vmem:[#allocation5] sm:$0xff]   ;;  %v315_v2 = vld [vmem:[#allocation5 + $0x8] sm:$0xff]  }
  0x37   :  { %278 = vmatprep.subr.bf16.mxu0 %v423_v0  ;;  %282 = vmatprep.mubr.msk.bf16.mxu0 %vm424_vm0, %v423_v0  ;;  %v58_v3 = vld [vmem:[#allocation2] sm:$0xff]  ;;  %v316_v4 = vld [vmem:[#allocation7] sm:$0xff]   ;;  %vm81_vm1 = vcmask 261120   ;;  %v318_v7 = vld [vmem:[#allocation7 + $0x10] sm:$0xff]   ;;  %s425_s28 = smov [#allocation8]  }
  0x38   :  { %286 = vmatprep.subr.bf16.mxu1 %v423_v0  ;;  %302 = vmatprep.mubr.msk.bf16.mxu1 %vm424_vm0, %v423_v0  ;;  %v59_v5 = vpack.c.bf16 %v58_v3, %v58_v3  ;;  %v317_v6 = vld [vmem:[#allocation7 + $0x8] sm:$0xff]   ;;  %v319_v8 = vld [vmem:[#allocation7 + $0x18] sm:$0xff]   ;;  %v320_v9 = vld [vmem:[#allocation7 + $0x20] sm:$0xff]   ;;  %s243_s29 = sshll.u32 %s425_s28, 4  ;;  %s244_s29 = int_to_ptr.vmem [resolvable:$true] %s243_s29 }
  0x39   :  { %279 = vmatpush3.bf16.msra.mxu0 %v314_v1  ;;  %287 = vmatpush3.bf16.msra.mxu1 %v316_v4  ;;  %v321_v10 = vld [vmem:[#allocation7 + $0x28] sm:$0xff]   ;;  %v322_v11 = vld [vmem:[#allocation7 + $0x30] sm:$0xff]   ;;  %v323_v12 = vld [vmem:[#allocation7 + $0x38] sm:$0xff]   ;;  %s390_s30 = scalar_lea.vmem %s244_s29, 128  ;;  %p395_p11 = scmp.lt.s32.totalorder %s244_s29, %s244_s29 }
  0x3a   :  { %280 = vmatprep.subr.bf16.mxu0 %v423_v0  ;;  %288 = vmatprep.subr.bf16.mxu1 %v423_v0  ;;  %v253_v13 = vld [vmem:[%s513_s2] ss:$0 sm:$0xff]  ;;  %v257_v21 = vld [vmem:[%s513_s2 + $0x1] ss:$0 sm:$0xff]  ;;  %p391_p10 = scmp.ne.s32.totalorder %s244_s29, %s390_s30  ;;  %p396_p12 = scmp.lt.s32.totalorder %s390_s30, %s390_s30 }
  0x3c   :  { %p397_p13 = por %p396_p12, %p395_p11 }
  0x3d   :  { %281 = vmatpush3.bf16.msra.mxu0 %v315_v2  ;;  %289 = vmatpush3.bf16.msra.mxu1 %v317_v6 }
  0x3e   :  { %290 = vmatprep.subr.bf16.mxu1 %v423_v0  ;;  %p398_p0 = pnand %p397_p13, %p391_p10 }
  0x40   :  { %283 = vmatmul.mubr.msk.bf16.vlgmr.msra.gmra.mrb[0].mxu0 %vm81_vm1, %v59_v5 }
  0x41   :  { %291 = vmatpush3.bf16.msra.mxu1 %v318_v7 }
  0x42   :  { %292 = vmatprep.subr.bf16.mxu1 %v423_v0 }
  0x45   :  { %293 = vmatpush3.bf16.msra.mxu1 %v319_v8 }
  0x46   :  { %294 = vmatprep.subr.bf16.mxu1 %v423_v0 }
  0x49   :  { %295 = vmatpush3.bf16.msra.mxu1 %v320_v9 }
  0x4a   :  { %296 = vmatprep.subr.bf16.mxu1 %v423_v0 }
  0x4d   :  { %297 = vmatpush3.bf16.msra.mxu1 %v321_v10 }
  0x4e   :  { %298 = vmatprep.subr.bf16.mxu1 %v423_v0 }
  0x51   :  { %299 = vmatpush3.bf16.msra.mxu1 %v322_v11 }
  0x52   :  { %300 = vmatprep.subr.bf16.mxu1 %v423_v0 }
  0x55   :  { %301 = vmatpush3.bf16.msra.mxu1 %v323_v12 }
 0x113   :  { %v119_v14 = vpop.f32.mrb[0].mxu0 }
 0x114   :  { %v120_v15 = vadd.f32 %v253_v13, %v119_v14  ;;  %v284_v16 = vpop.f32.mrb[1].mxu0 }
 0x115   :  { %v122_v17 = vpop.f32.mrb[2].mxu0 }
 0x116   :  { %v125_v18 = vmax.f32 %v120_v15, 0.0  ;;  %v285_v19 = vpop.f32.mrb[3].mxu0 }
 0x118   :  { %v126_v20 = vpack.c.bf16 %v125_v18, %v125_v18 }
 0x11a   :  { %303 = vmatmul.mubr.bf16.vlgmr.msra.gmra.mrb[0].mxu1 %v126_v20 }
 0x1ed   :  { %v230_v22 = vpop.f32.mrb[0].mxu1 }
 0x1ee   :  { %v231_v23 = vadd.f32 %v257_v21, %v230_v22  ;;  %v304_v24 = vpop.f32.mrb[1].mxu1 }
 0x1ef   :  { %v233_v25 = vpop.f32.mrb[2].mxu1 }
 0x1f0   :  { %236 = vst [vmem:[#allocation8] sm:$0xff] %v231_v23  ;;  %v305_v26 = vpop.f32.mrb[3].mxu1 }
 0x1f1   :  { %401 = shalt.err (!%p398_p0)
}
 0x1f2   :  { %s402_s2 = scalar_lea.hbm %s515_s4, 128 }
 0x1f3   :  { %p403_p1 = scmp.ne.s32.totalorder %s515_s4, %s402_s2  ;;  %p406_p2 = scmp.lt.u32.totalorder %s402_s2, %s515_s4 }
 0x1f5   :  { %p408_p3 = pnand %p406_p2, %p403_p1 }
 0x1f7   :  { %411 = shalt.err (!%p408_p3)
}
 0x1f8   :  { %246 = dma.vmem_to_hbm [thread:$0]  %s244_s29, 128, %s515_s4, [#allocation4]  }
 0x1f9   :  { %416 = dma.done.wait [#allocation4], 128  }
 0x1fa   :  { %417 = vsyncadd [#allocation4], 4294967168 }
 0x1fb   :  { %250 = vsyncpa [#allocation3], 1 }
 0x1fc   :  { %251 = vsyncpa [#allocation6], 1 }
 0x1fd   :  { %252 = vsyncpa [#allocation4], 1 }

</bundles_post_ra>
